<compile_context>
chip_gen: v5e
topology: v5e:2x2
jax: 0.10.0
libtpu: 0.0.40
codegen_flags: <defaults>
</compile_context>

<pallas_src>
import functools

import numpy as np

import jax
import jax.numpy as jnp
from jax import lax
from jax.experimental import pallas as pl
from jax.experimental.pallas import tpu as pltpu


def _round_up(x, m):
    return ((x + m - 1) // m) * m


def _fused_resnet_kernel(x_ref, sa_ref, w1_ref, w2_ref, e_ref, vec_ref,
                         o_ref, acc_ref, *, d0, n_sa, eps):
    """One ResBlock layer per grid step (layer axis = grid axis 1).

    x_ref:   [TB, P]     f32  initial activation (zero-padded), read at layer 0
    sa_ref:  [TB, SA_P]  bf16 [state|action], zero-padded
    w1_ref:  [1, P, H]   bf16 first Linear weight of this layer ([in, out])
    w2_ref:  [1, H, P]   bf16 second Linear weight of this layer
    e_ref:   [1, SA_P, P] bf16 one-hot placement of [state|action] at lane D_i
    vec_ref: [1, 8, PB]  f32  rows: b1, b2, gamma, beta (zero-padded)
    o_ref:   [TB, P]     f32  final activation (written at last layer)
    acc_ref: [TB, P]     f32  VMEM scratch holding the running activation
    """
    l = pl.program_id(1)
    P = o_ref.shape[-1]
    H = w1_ref.shape[-1]

    @pl.when(l == 0)
    def _():
        acc_ref[...] = x_ref[...]

    act = acc_ref[...]                                  # [TB, P] f32, pad lanes == 0
    w1 = w1_ref[0]                                      # [P, H]  bf16
    w2 = w2_ref[0]                                      # [H, P]  bf16
    e = e_ref[0]                                        # [SA_P, P] bf16
    vec = vec_ref[0]                                    # [8, PB] f32
    b1 = vec[0:1, :H]
    b2 = vec[1:2, :P]
    gamma = vec[2:3, :P]
    beta = vec[3:4, :P]

    # Linear -> ReLU -> Linear on the MXU (bf16 operands, f32 accumulation).
    # Zero-padded weights/biases keep pad lanes of h and x2 exactly 0.
    h = jnp.dot(act.astype(jnp.bfloat16), w1,
                preferred_element_type=jnp.float32) + b1
    h = jnp.maximum(h, 0.0)
    x2 = jnp.dot(h.astype(jnp.bfloat16), w2,
                 preferred_element_type=jnp.float32) + b2

    # "concat([.., state, action])" = add of [state|action] placed at lane D_l
    # via a one-hot matmul (no lane concat, no per-layer [L,B,P] DMA traffic).
    sa_placed = jnp.dot(sa_ref[...], e, preferred_element_type=jnp.float32)

    z = act + x2 + sa_placed                            # pad lanes exactly 0

    # LayerNorm over the n valid lanes (biased variance, torch semantics).
    n = d0 + (l + 1) * n_sa                             # valid width of layer l
    n_f = n.astype(jnp.float32)
    inv_n = 1.0 / n_f
    mean = jnp.sum(z, axis=-1, keepdims=True) * inv_n   # exact: pad lanes of z are 0
    c = z - mean
    lane = lax.broadcasted_iota(jnp.int32, (1, P), 1)
    cm = jnp.where(lane < n, c, 0.0)                    # exact lane mask for variance
    var = jnp.sum(cm * cm, axis=-1, keepdims=True) * inv_n
    inv = lax.rsqrt(var + eps)
    # gamma/beta are zero beyond n -> pad lanes come out exactly 0 again.
    acc_ref[...] = c * inv * gamma + beta

    @pl.when(l == pl.num_programs(1) - 1)
    def _():
        o_ref[...] = acc_ref[...]


def _pack_params(all_params, input_num, n_s, n_a):
    """Pack per-layer params once (host-side numpy) into lane-dense stacks."""
    f32 = np.float32
    n_sa = n_s + n_a
    L = len(all_params)
    layer_dims = [input_num + i * n_sa for i in range(L)]
    d_max = layer_dims[-1]
    out_dim = input_num + L * n_sa

    P = _round_up(out_dim, 128)          # activation / output lane width
    H = _round_up(2 * d_max, 128)        # hidden lane width
    SA_P = _round_up(n_sa, 128)          # [state|action] lane width
    PB = max(H, P)

    w1_stack = np.zeros((L, P, H), f32)
    w2_stack = np.zeros((L, H, P), f32)
    e_stack = np.zeros((L, SA_P, P), f32)
    vec_stack = np.zeros((L, 8, PB), f32)   # rows: b1, b2, gamma, beta
    for i, (w1, b1, w2, b2, gamma, beta) in enumerate(all_params):
        d = layer_dims[i]
        n = d + n_sa
        w1_stack[i, :d, :2 * d] = np.asarray(w1, f32)
        w2_stack[i, :2 * d, :d] = np.asarray(w2, f32)
        vec_stack[i, 0, :2 * d] = np.asarray(b1, f32)
        vec_stack[i, 1, :d] = np.asarray(b2, f32)
        vec_stack[i, 2, :n] = np.asarray(gamma, f32)
        vec_stack[i, 3, :n] = np.asarray(beta, f32)
        e_stack[i, np.arange(n_sa), d + np.arange(n_sa)] = 1.0

    packed = dict(
        w1=jnp.asarray(w1_stack, jnp.bfloat16),
        w2=jnp.asarray(w2_stack, jnp.bfloat16),
        e=jnp.asarray(e_stack, jnp.bfloat16),
        vec=jnp.asarray(vec_stack, jnp.float32),
    )
    meta = dict(L=L, d0=input_num, n_sa=n_sa, P=P, H=H, SA_P=SA_P, PB=PB,
                out_dim=out_dim)
    return packed, meta


def make_my_module2_forward(all_params, input_num, n_s, n_a, *, eps=1e-5):
    """Build a jitted forward(x, state, action) with params packed once."""
    packed, meta = _pack_params(all_params, input_num, n_s, n_a)
    L, d0, n_sa = meta["L"], meta["d0"], meta["n_sa"]
    P, H, SA_P, PB = meta["P"], meta["H"], meta["SA_P"], meta["PB"]
    out_dim = meta["out_dim"]

    def forward(x, state, action):
        B = x.shape[0]
        # Batch tiling: one block at small batch, 256-row parallel blocks else
        # (fills the 256-wide MXU M dim on v6e/v7x, amortizes grid-step cost).
        if B <= 256:
            TB = _round_up(max(B, 8), 8)
            Bp = TB
        else:
            TB = 256
            Bp = _round_up(B, TB)

        x_pad = jnp.zeros((Bp, P), jnp.float32).at[:B, :d0].set(
            x.astype(jnp.float32))
        sa = jnp.concatenate([state, action], axis=-1).astype(jnp.bfloat16)
        sa_pad = jnp.zeros((Bp, SA_P), jnp.bfloat16).at[:B, :n_sa].set(sa)

        grid = (Bp // TB, L)

        kernel = functools.partial(_fused_resnet_kernel,
                                   d0=d0, n_sa=n_sa, eps=float(eps))

        # VMEM budget: double-buffered per-layer weights + io blocks + scratch.
        per_layer_w = (P * H + H * P + SA_P * P) * 2 + 8 * PB * 4
        io_bufs = 2 * (TB * P * 4) + 2 * (TB * SA_P * 2) + 2 * (TB * P * 4)
        vmem_bytes = 2 * per_layer_w + io_bufs + TB * P * 4
        vmem_limit = int(min(96 << 20, max(32 << 20, 3 * vmem_bytes)))

        out = pl.pallas_call(
            kernel,
            out_shape=jax.ShapeDtypeStruct((Bp, P), jnp.float32),
            grid_spec=pltpu.PrefetchScalarGridSpec(
                num_scalar_prefetch=0,
                grid=grid,
                in_specs=[
                    pl.BlockSpec((TB, P), lambda b, l: (b, 0)),          # x
                    pl.BlockSpec((TB, SA_P), lambda b, l: (b, 0)),       # [state|action]
                    pl.BlockSpec((1, P, H), lambda b, l: (l, 0, 0)),     # W1 (streamed)
                    pl.BlockSpec((1, H, P), lambda b, l: (l, 0, 0)),     # W2 (streamed)
                    pl.BlockSpec((1, SA_P, P), lambda b, l: (l, 0, 0)),  # placement
                    pl.BlockSpec((1, 8, PB), lambda b, l: (l, 0, 0)),    # b1,b2,gamma,beta
                ],
                out_specs=pl.BlockSpec((TB, P), lambda b, l: (b, 0)),
                scratch_shapes=[pltpu.VMEM((TB, P), jnp.float32)],
            ),
            compiler_params=pltpu.CompilerParams(
                dimension_semantics=("parallel", "arbitrary"),
                vmem_limit_bytes=vmem_limit),
        )(x_pad, sa_pad, packed["w1"], packed["w2"], packed["e"], packed["vec"])

        return out[:B, :out_dim]

    return jax.jit(forward)


def init_resblock_params(key, d_in, n_s, n_a):
    """Deterministic synthetic init. Linear weights stored as [in, out]."""
    k1, k2, k3, k4 = jax.random.split(key, 4)
    scale1 = 1.0 / jnp.sqrt(d_in)
    scale2 = 1.0 / jnp.sqrt(2 * d_in)
    w1 = jax.random.uniform(k1, (d_in, 2 * d_in), jnp.float32, -scale1, scale1)
    b1 = jax.random.uniform(k2, (2 * d_in,), jnp.float32, -scale1, scale1)
    w2 = jax.random.uniform(k3, (2 * d_in, d_in), jnp.float32, -scale2, scale2)
    b2 = jax.random.uniform(k4, (d_in,), jnp.float32, -scale2, scale2)
    norm_dim = d_in + n_s + n_a
    gamma = jnp.ones((norm_dim,), jnp.float32)   # nn.LayerNorm default affine init
    beta = jnp.zeros((norm_dim,), jnp.float32)
    return (w1, b1, w2, b2, gamma, beta)


def _ref_forward(x, state, action, all_params, eps=1e-5):
    """Pure-JAX reference (mirrors the PyTorch module)."""
    for (w1, b1, w2, b2, gamma, beta) in all_params:
        h = jnp.maximum(x @ w1 + b1, 0.0)
        x2 = h @ w2 + b2
        cat = jnp.concatenate([x + x2, state, action], axis=-1)
        mu = jnp.mean(cat, axis=-1, keepdims=True)
        var = jnp.mean((cat - mu) ** 2, axis=-1, keepdims=True)
        x = (cat - mu) / jnp.sqrt(var + eps) * gamma + beta
    return x


if __name__ == "__main__":
    # Small shapes consistent with the module's forward:
    #   x: [B, input_num], state: [B, n_s], action: [B, n_a]
    B = 8
    input_num, n_s, n_a, num_layer = 32, 16, 16, 2

    key = jax.random.PRNGKey(0)
    kx, ks, ka, kp = jax.random.split(key, 4)
    x = jax.random.normal(kx, (B, input_num), jnp.float32)
    state = jax.random.normal(ks, (B, n_s), jnp.float32)
    action = jax.random.normal(ka, (B, n_a), jnp.float32)

    all_params = []
    d = input_num
    pkeys = jax.random.split(kp, num_layer)
    for i in range(num_layer):
        all_params.append(init_resblock_params(pkeys[i], d, n_s, n_a))
        d = d + n_s + n_a

    forward = make_my_module2_forward(all_params, input_num, n_s, n_a)
    out = forward(x, state, action)
    out = jax.block_until_ready(out)

    expected_dim = input_num + num_layer * (n_s + n_a)
    assert out.shape == (B, expected_dim), out.shape
    assert bool(jnp.all(jnp.isfinite(out)))

    ref = _ref_forward(x, state, action, all_params)
    assert jnp.allclose(out, ref, atol=5e-2, rtol=5e-2), \
        float(jnp.max(jnp.abs(out - ref)))
    print("KERNEL_OK")
</pallas_src>

<mosaic_0001>
module attributes {stable_mosaic.version = 11 : i64} {
  func.func @_fused_resnet_kernel(%arg0: i32, %arg1: i32, %arg2: memref<8x128xf32, #tpu.memory_space<vmem>>, %arg3: memref<8x128xbf16, #tpu.memory_space<vmem>>, %arg4: memref<1x128x128xbf16, #tpu.memory_space<vmem>>, %arg5: memref<1x128x128xbf16, #tpu.memory_space<vmem>>, %arg6: memref<1x128x128xbf16, #tpu.memory_space<vmem>>, %arg7: memref<1x8x128xf32, #tpu.memory_space<vmem>>, %arg8: memref<8x128xf32, #tpu.memory_space<vmem>>, %arg9: memref<8x128xf32, #tpu.memory_space<vmem>>) attributes {dimension_semantics = [#tpu.dimension_semantics<parallel>, #tpu.dimension_semantics<arbitrary>], iteration_bounds = array<i64: 1, 2>, scalar_prefetch = 0 : i64, scratch_operands = 1 : i64, tpu.core_type = #tpu.core_type<tc>, window_params = [{transform_indices = @transform_0, window_bounds = array<i64: 8, 128>}, {transform_indices = @transform_1, window_bounds = array<i64: 8, 128>}, {transform_indices = @transform_2, window_bounds = array<i64: 1, 128, 128>}, {transform_indices = @transform_3, window_bounds = array<i64: 1, 128, 128>}, {transform_indices = @transform_4, window_bounds = array<i64: 1, 128, 128>}, {transform_indices = @transform_5, window_bounds = array<i64: 1, 8, 128>}, {transform_indices = @transform_6, window_bounds = array<i64: 8, 128>}]} {
    %c0_i32 = arith.constant 0 : i32
    %0 = arith.cmpi eq, %arg1, %c0_i32 : i32
    %1 = arith.extui %0 : i1 to i32
    %c0_i32_0 = arith.constant 0 : i32
    %2 = arith.cmpi ne, %1, %c0_i32_0 : i32
    scf.if %2 {
      %c0_29 = arith.constant 0 : index
      %c0_30 = arith.constant 0 : index
      %66 = vector.load %arg2[%c0_29, %c0_30] : memref<8x128xf32, #tpu.memory_space<vmem>>, vector<8x128xf32>
      %c0_31 = arith.constant 0 : index
      %c0_32 = arith.constant 0 : index
      %67 = vector.load %arg9[%c0_31, %c0_32] : memref<8x128xf32, #tpu.memory_space<vmem>>, vector<8x128xf32>
      tpu.vector_store %arg9[%c0_31, %c0_32], %66 {strides = array<i32>} : memref<8x128xf32, #tpu.memory_space<vmem>>, vector<8x128xf32>,
    } else {
    }
    %c0 = arith.constant 0 : index
    %c0_1 = arith.constant 0 : index
    %3 = vector.load %arg9[%c0, %c0_1] : memref<8x128xf32, #tpu.memory_space<vmem>>, vector<8x128xf32>
    %c0_2 = arith.constant 0 : index
    %c0_3 = arith.constant 0 : index
    %c0_4 = arith.constant 0 : index
    %4 = vector.load %arg4[%c0_2, %c0_3, %c0_4] : memref<1x128x128xbf16, #tpu.memory_space<vmem>>, vector<1x128x128xbf16>
    %5 = vector.shape_cast %4 : vector<1x128x128xbf16> to vector<128x128xbf16>
    %c0_5 = arith.constant 0 : index
    %c0_6 = arith.constant 0 : index
    %c0_7 = arith.constant 0 : index
    %6 = vector.load %arg5[%c0_5, %c0_6, %c0_7] : memref<1x128x128xbf16, #tpu.memory_space<vmem>>, vector<1x128x128xbf16>
    %7 = vector.shape_cast %6 : vector<1x128x128xbf16> to vector<128x128xbf16>
    %c0_8 = arith.constant 0 : index
    %c0_9 = arith.constant 0 : index
    %c0_10 = arith.constant 0 : index
    %8 = vector.load %arg6[%c0_8, %c0_9, %c0_10] : memref<1x128x128xbf16, #tpu.memory_space<vmem>>, vector<1x128x128xbf16>
    %9 = vector.shape_cast %8 : vector<1x128x128xbf16> to vector<128x128xbf16>
    %c0_11 = arith.constant 0 : index
    %c0_12 = arith.constant 0 : index
    %c0_13 = arith.constant 0 : index
    %10 = vector.load %arg7[%c0_11, %c0_12, %c0_13] : memref<1x8x128xf32, #tpu.memory_space<vmem>>, vector<1x8x128xf32>
    %11 = vector.shape_cast %10 : vector<1x8x128xf32> to vector<8x128xf32>
    %12 = vector.extract_strided_slice %11 {offsets = [0, 0], sizes = [1, 128], strides = [1, 1]} : vector<8x128xf32> to vector<1x128xf32>
    %13 = vector.extract_strided_slice %11 {offsets = [1, 0], sizes = [1, 128], strides = [1, 1]} : vector<8x128xf32> to vector<1x128xf32>
    %14 = vector.extract_strided_slice %11 {offsets = [2, 0], sizes = [1, 128], strides = [1, 1]} : vector<8x128xf32> to vector<1x128xf32>
    %15 = vector.extract_strided_slice %11 {offsets = [3, 0], sizes = [1, 128], strides = [1, 1]} : vector<8x128xf32> to vector<1x128xf32>
    %16 = arith.truncf %3 : vector<8x128xf32> to vector<8x128xbf16>
    %cst = arith.constant dense<0.000000e+00> : vector<8x128xf32>
    %17 = tpu.matmul %16, %5, %cst {dimension_numbers = #tpu.dot_dimension_numbers<[1], [0], [0], [1], [0, 0, 1, 1], [], []>} : vector<8x128xbf16>, vector<128x128xbf16>, vector<8x128xf32> -> vector<8x128xf32>
    %18 = vector.broadcast %12 : vector<1x128xf32> to vector<8x128xf32>
    %19 = arith.addf %17, %18 : vector<8x128xf32>
    %cst_14 = arith.constant 0.000000e+00 : f32
    %20 = vector.broadcast %cst_14 : f32 to vector<8x128xf32>
    %21 = arith.maximumf %19, %20 : vector<8x128xf32>
    %22 = arith.truncf %21 : vector<8x128xf32> to vector<8x128xbf16>
    %cst_15 = arith.constant dense<0.000000e+00> : vector<8x128xf32>
    %23 = tpu.matmul %22, %7, %cst_15 {dimension_numbers = #tpu.dot_dimension_numbers<[1], [0], [0], [1], [0, 0, 1, 1], [], []>} : vector<8x128xbf16>, vector<128x128xbf16>, vector<8x128xf32> -> vector<8x128xf32>
    %24 = vector.broadcast %13 : vector<1x128xf32> to vector<8x128xf32>
    %25 = arith.addf %23, %24 : vector<8x128xf32>
    %c0_16 = arith.constant 0 : index
    %c0_17 = arith.constant 0 : index
    %26 = vector.load %arg3[%c0_16, %c0_17] : memref<8x128xbf16, #tpu.memory_space<vmem>>, vector<8x128xbf16>
    %cst_18 = arith.constant dense<0.000000e+00> : vector<8x128xf32>
    %27 = tpu.matmul %26, %9, %cst_18 {dimension_numbers = #tpu.dot_dimension_numbers<[1], [0], [0], [1], [0, 0, 1, 1], [], []>} : vector<8x128xbf16>, vector<128x128xbf16>, vector<8x128xf32> -> vector<8x128xf32>
    %28 = arith.addf %3, %25 : vector<8x128xf32>
    %29 = arith.addf %28, %27 : vector<8x128xf32>
    %c1_i32 = arith.constant 1 : i32
    %30 = arith.addi %arg1, %c1_i32 : i32
    %c32_i32 = arith.constant 32 : i32
    %31 = arith.muli %30, %c32_i32 : i32
    %c32_i32_19 = arith.constant 32 : i32
    %32 = arith.addi %c32_i32_19, %31 : i32
    %33 = arith.sitofp %32 : i32 to f32
    %cst_20 = arith.constant 1.000000e+00 : f32
    %34 = arith.divf %cst_20, %33 : f32
    %cst_21 = arith.constant dense<0.000000e+00> : vector<8xf32>
    %35 = vector.multi_reduction <add>, %29, %cst_21 [1] : vector<8x128xf32> to vector<8xf32>
    %36 = vector.shape_cast %35 : vector<8xf32> to vector<8x1xf32>
    %37 = vector.broadcast %34 : f32 to vector<8x1xf32>
    %38 = arith.mulf %36, %37 : vector<8x1xf32>
    %39 = vector.broadcast %38 : vector<8x1xf32> to vector<8x128xf32>
    %40 = arith.subf %29, %39 : vector<8x128xf32>
    %41 = tpu.iota {dimensions = array<i32: 1>} : vector<1x128xi32>
    %42 = vector.broadcast %32 : i32 to vector<1x128xi32>
    %43 = arith.cmpi slt, %41, %42 : vector<1x128xi32>
    %cst_22 = arith.constant 0.000000e+00 : f32
    %44 = vector.shape_cast %43 : vector<1x128xi1> to vector<1x128xi1>
    %45 = vector.broadcast %44 : vector<1x128xi1> to vector<8x128xi1>
    %46 = vector.broadcast %cst_22 : f32 to vector<8x128xf32>
    %47 = arith.select %45, %40, %46 : vector<8x128xi1>, vector<8x128xf32>
    %48 = arith.mulf %47, %47 : vector<8x128xf32>
    %cst_23 = arith.constant dense<0.000000e+00> : vector<8xf32>
    %49 = vector.multi_reduction <add>, %48, %cst_23 [1] : vector<8x128xf32> to vector<8xf32>
    %50 = vector.shape_cast %49 : vector<8xf32> to vector<8x1xf32>
    %51 = vector.broadcast %34 : f32 to vector<8x1xf32>
    %52 = arith.mulf %50, %51 : vector<8x1xf32>
    %cst_24 = arith.constant 9.99999974E-6 : f32
    %53 = vector.broadcast %cst_24 : f32 to vector<8x1xf32>
    %54 = arith.addf %52, %53 : vector<8x1xf32>
    %55 = math.rsqrt %54 : vector<8x1xf32>
    %56 = vector.broadcast %55 : vector<8x1xf32> to vector<8x128xf32>
    %57 = arith.mulf %40, %56 : vector<8x128xf32>
    %58 = vector.broadcast %14 : vector<1x128xf32> to vector<8x128xf32>
    %59 = arith.mulf %57, %58 : vector<8x128xf32>
    %60 = vector.broadcast %15 : vector<1x128xf32> to vector<8x128xf32>
    %61 = arith.addf %59, %60 : vector<8x128xf32>
    %c0_25 = arith.constant 0 : index
    %c0_26 = arith.constant 0 : index
    %62 = vector.load %arg9[%c0_25, %c0_26] : memref<8x128xf32, #tpu.memory_space<vmem>>, vector<8x128xf32>
    tpu.vector_store %arg9[%c0_25, %c0_26], %61 {strides = array<i32>} : memref<8x128xf32, #tpu.memory_space<vmem>>, vector<8x128xf32>,
    %c1_i32_27 = arith.constant 1 : i32
    %63 = arith.cmpi eq, %arg1, %c1_i32_27 : i32
    %64 = arith.extui %63 : i1 to i32
    %c0_i32_28 = arith.constant 0 : i32
    %65 = arith.cmpi ne, %64, %c0_i32_28 : i32
    scf.if %65 {
      %c0_29 = arith.constant 0 : index
      %c0_30 = arith.constant 0 : index
      %66 = vector.load %arg9[%c0_29, %c0_30] : memref<8x128xf32, #tpu.memory_space<vmem>>, vector<8x128xf32>
      %c0_31 = arith.constant 0 : index
      %c0_32 = arith.constant 0 : index
      %67 = vector.load %arg8[%c0_31, %c0_32] : memref<8x128xf32, #tpu.memory_space<vmem>>, vector<8x128xf32>
      tpu.vector_store %arg8[%c0_31, %c0_32], %66 {strides = array<i32>} : memref<8x128xf32, #tpu.memory_space<vmem>>, vector<8x128xf32>,
    } else {
    }
    return
  }
  func.func @transform_0(%arg0: i32, %arg1: i32) -> (i32, i32) {
    %c0_i32 = arith.constant 0 : i32
    %c0_i32_0 = arith.constant 0 : i32
    return %arg0, %c0_i32 : i32, i32
  }
  func.func @transform_1(%arg0: i32, %arg1: i32) -> (i32, i32) {
    %c0_i32 = arith.constant 0 : i32
    %c0_i32_0 = arith.constant 0 : i32
    return %arg0, %c0_i32 : i32, i32
  }
  func.func @transform_2(%arg0: i32, %arg1: i32) -> (i32, i32, i32) {
    %c0_i32 = arith.constant 0 : i32
    %c0_i32_0 = arith.constant 0 : i32
    %c0_i32_1 = arith.constant 0 : i32
    return %arg1, %c0_i32, %c0_i32_0 : i32, i32, i32
  }
  func.func @transform_3(%arg0: i32, %arg1: i32) -> (i32, i32, i32) {
    %c0_i32 = arith.constant 0 : i32
    %c0_i32_0 = arith.constant 0 : i32
    %c0_i32_1 = arith.constant 0 : i32
    return %arg1, %c0_i32, %c0_i32_0 : i32, i32, i32
  }
  func.func @transform_4(%arg0: i32, %arg1: i32) -> (i32, i32, i32) {
    %c0_i32 = arith.constant 0 : i32
    %c0_i32_0 = arith.constant 0 : i32
    %c0_i32_1 = arith.constant 0 : i32
    return %arg1, %c0_i32, %c0_i32_0 : i32, i32, i32
  }
  func.func @transform_5(%arg0: i32, %arg1: i32) -> (i32, i32, i32) {
    %c0_i32 = arith.constant 0 : i32
    %c0_i32_0 = arith.constant 0 : i32
    %c0_i32_1 = arith.constant 0 : i32
    return %arg1, %c0_i32, %c0_i32_0 : i32, i32, i32
  }
  func.func @transform_6(%arg0: i32, %arg1: i32) -> (i32, i32) {
    %c0_i32 = arith.constant 0 : i32
    %c0_i32_0 = arith.constant 0 : i32
    return %arg0, %c0_i32 : i32, i32
  }
}

</mosaic_0001>

<bundles_post_ra>
// kernel: forward.1
= control target key start
LH: loop header
LB: loop body
LE: loop exit
PB: predicated region body
PF: predicated region fallthrough
CT: control target
= control target key end

     0   :  { %s1492_s0 = inlined_call_operand.vmem [shape: f32[8,128], index: 0, kind: input, shape index: {}]   ;;  %s1493_s1 = inlined_call_operand.vmem [shape: bf16[8,128], index: 1, kind: input, shape index: {}]   ;;  %s1494_s2 = inlined_call_operand.hbm [shape: bf16[2,128,128], index: 2, kind: input, shape index: {}]   ;;  %s1495_s3 = inlined_call_operand.hbm [shape: bf16[2,128,128], index: 3, kind: input, shape index: {}]   ;;  %s1496_s4 = inlined_call_operand.hbm [shape: bf16[2,128,128], index: 4, kind: input, shape index: {}]   ;;  %s1497_s5 = inlined_call_operand.vmem [shape: f32[2,8,128], index: 5, kind: input, shape index: {}]   ;;  %s1498_s6 = inlined_call_operand.hbm [shape: f32[8,128], index: 6, kind: output, shape index: {}]  }
   0x1   :  { %1503 = sst [smem:[#allocation18_spill]] %s1495_s3 }
   0x2   :  { %11 = vsyncpa [#allocation4], 0 }
   0x3   :  { %13 = vsyncpa [#allocation4 + $0x1], 0 }
   0x4   :  { %14 = vsyncpa [#allocation7], 0 }
   0x5   :  { %16 = vsyncpa [#allocation7 + $0x1], 0 }
   0x6   :  { %17 = vsyncpa [#allocation5], 0  ;;  %s1319_s21 = smov 0   ;;  %s1321_s22 = smov 0  }
   0x7   :  { %s1323_s23 = smov 0   ;;  %s1325_s24 = smov 0  }
   0x8   :  { %s1327_s25 = smov 0   ;;  %s1329_s26 = smov 0  }
   0x9 LB: > { %1504 = sst [smem:[#allocation13_spill]] %s1267_s23  ;;  %s1348_s27 = sadd.s32 4294967295, %s1279_s26   ;;  %s1279_s26 = sphi %s1329_s26, %s23_s26   ;;  %s1275_s25 = sphi %s1327_s25, %s1517_s25   ;;  %s1271_s24 = sphi %s1325_s24, %s1520_s24   ;;  %s1267_s23 = sphi %s1323_s23, %s1515_s23   ;;  %s1263_s22 = sphi %s1321_s22, %s1519_s22   ;;  %s1259_s21 = sphi %s1319_s21, %s1518_s21  }
   0xa   : > { %1505 = sst [smem:[#allocation14_spill]] %s1275_s25  ;;  %s32_s28 = sadd.s32 1, %s1275_s25 }
   0xb   : > { %1506 = sst [smem:[#allocation15_spill]] %s1279_s26  ;;  %p33_p0 = scmp.ge.s32.totalorder %s32_s28, 2 }
   0xc   : > { %s94_s29 = sadd.s32 1, %s1267_s23  ;;  %p101_p1 = scmp.ne.s32.totalorder %s1267_s23, %s1263_s22 }
   0xd   : > { %p102_p2 = scmp.eq.s32.totalorder %s1279_s26, 0  ;;  %s1522_s28 = smov (%p33_p0, %s32_s28), 0 }
   0xe   : > { %1507 = sst [smem:[#allocation16_spill]] %s1522_s28  ;;  %p107_p4 = scmp.ne.s32.totalorder %s1263_s22, %s1259_s21 }
   0xf   : > { %p103_p3 = por %p102_p2, %p101_p1  ;;  %s91_s30 = ssub.s32 %s1275_s25, %s1522_s28 }
  0x10   : > { %p108_p5 = scmp.eq.s32.totalorder %s1348_s27, 0  ;;  %p92_p6 = scmp.eq.s32.totalorder %s91_s30, 0 }
  0x11   : > { %p1045_p8 = scmp.lt.s32.totalorder %s1279_s26, 2  ;;  %s249_s9 = sand.u32 1, %s1267_s23  }
  0x12   : > { %p1361_p7 = por %p108_p5, %p107_p4  ;;  %s1371_s10 = sshll.u32 %s1275_s25, 6 }
  0x13   : > { %s1367_s8 = scalar_select %p92_p6, %s1267_s23, %s94_s29  }
  0x14   : > { %s877_s11 = sshll.u32 %s249_s9, 6  ;;  %p1373_p9 = pnand %p1045_p8, %p103_p3 }
  0x15   : > { %1509 = sst [smem:[#allocation17_spill]] %s1367_s8  ;;  %s271_s13 = sand.u32 1, %s1279_s26  }
  0x16   : > { %s1511_s3 = sld [smem:[#allocation18_spill]]  ;;  %s275_s17 = scalar_lea.vmem [#allocation6], %s877_s11 }
  0x17   : > { %s283_s18 = sshll.u32 %s275_s17, 4  ;;  %p886_p10 = scmp.ge.s32.totalorder %s1279_s26, 1  ;;  %s284_s18 = int_to_ptr.vmem [resolvable:$true] %s283_s18 }
  0x18   : > { %s272_s20 = scalar_lea.sflag [#allocation7], %s271_s13  ;;  %s1281_s21 = smov 64  }
  0x19   : > { %s1282_s29 = smov 4   ;;  %p320_p11 = scmp.lt.s32.totalorder %s1279_s26, 3 }
  0x1a   : > { %s253_s17 = scalar_lea.vmem [#allocation3], %s877_s11  ;;  %s250_s13 = scalar_lea.sflag [#allocation4], %s249_s9 }
  0x1b   : > { %p1386_p12 = pnand %p886_p10, %p320_p11  ;;  %s297_s8 = scalar_lea.vmem [#allocation8], %s877_s11 }
  0x1c   : > { %s280_s16 = scalar_lea.hbm %s1511_s3, %s1371_s10  ;;  %s261_s3 = sshll.u32 %s253_s17, 4  ;;  %s262_s3 = int_to_ptr.vmem [resolvable:$true] %s261_s3 }
  0x1d   : > { %s281_s19 = sshll.u32 %s280_s16, 4  ;;  %s258_s16 = scalar_lea.hbm %s1494_s2, %s1371_s10  ;;  %s282_s19 = int_to_ptr.hbm [resolvable:$true] %s281_s19 }
  0x1e   : > { %1041 = dma.hbm_to_vmem [thread:$0]  (!%p1373_p9), %s282_s19, 1024, %s284_s18, %s272_s20, %s1281_s21, %s1281_s21, %s1282_s29  }
  0x1f   : > { %s259_s28 = sshll.u32 %s258_s16, 4  ;;  %s302_s19 = scalar_lea.hbm %s1496_s4, %s1371_s10  ;;  %s260_s28 = int_to_ptr.hbm [resolvable:$true] %s259_s28 }
  0x20   : > { %1038 = dma.hbm_to_vmem [thread:$0]  (!%p1373_p9), %s260_s28, 1024, %s262_s3, %s250_s13, %s1281_s21, %s1281_s21, %s1282_s29  }
  0x21   : > { %s305_s23 = sshll.u32 %s297_s8, 4  ;;  %s303_s26 = sshll.u32 %s302_s19, 4  ;;  %s306_s23 = int_to_ptr.vmem [resolvable:$true] %s305_s23  ;;  %s304_s26 = int_to_ptr.hbm [resolvable:$true] %s303_s26 }
  0x22   : > { %1044 = dma.hbm_to_vmem [thread:$0]  (!%p1373_p9), %s304_s26, 1024, %s306_s23, %s272_s20, %s1281_s21, %s1281_s21, %s1282_s29  }
  0x23   : > { %324 = sbr.rel (%p1386_p12) target bundleno = 632 (0x278), region = 44  ;;  %s326_s14 = sand.u32 (!%p1386_p12), 1, %s1263_s22  }
  0x24   : > { %s887_s9 = sshll.u32 (!%p1386_p12), %s326_s14, 6  ;;  %s327_s15 = scalar_lea.sflag (!%p1386_p12), [#allocation4], %s326_s14 }
  0x25   : > { %s1405_s3 = scalar_lea.vmem (!%p1386_p12), [#allocation3], %s887_s9 }
  0x28   : > { %1246 = dma.done.wait (%p1361_p7), %s327_s15, 1024  }
  0x29   : > { %1248 = vsyncadd (%p1361_p7), %s327_s15, 4294966272  ;;  %s336_s25 = sand.u32 1, %s1348_s27   ;;  %s1412_s23 = scalar_lea.vmem [#allocation6], %s887_s9 }
  0x2a   : > { %s337_s28 = scalar_lea.sflag [#allocation7], %s336_s25 }
  0x2b   : > { %1250 = dma.done.wait (%p1361_p7), %s337_s28, 2048  }
  0x2c   : > { %1252 = vsyncadd (%p1361_p7), %s337_s28, 4294965248  ;;  %p405_p13 = scmp.lt.s32.totalorder %s1271_s24, 1  ;;  %s1425_s20 = scalar_lea.vmem [#allocation8], %s887_s9 }
  0x2d   : > { %p891_p0 = scmp.ne.s32.totalorder %s1271_s24, 0 }
  0x2e   : > { %s406_s26 = scalar_select %p405_p13, %s1271_s24, 1 }
  0x2f   : > { %412 = sbr.rel (%p891_p0) target bundleno = 54 (0x36), region = 60 }
  0x30   : > { %s890_s8 = sshll.u32 %s406_s26, 3 }
  0x31   : > { %s1423_s12 = scalar_lea.vmem %s1497_s5, %s890_s8 }
  0x34   : > { %v413_v0 = vld [vmem:[%s1492_s0] sm:$0xff] }
  0x35   : > { %414 = vst [vmem:[#allocation2] sm:$0xff] %v413_v0 }
  0x36 PF: > { %v1004_v1 = vld [vmem:[%s1405_s3 + $0x38] sm:$0xff]  ;;  %v1003_v2 = vld [vmem:[%s1405_s3 + $0x30] sm:$0xff]  ;;  %v1002_v6 = vld [vmem:[%s1405_s3 + $0x28] sm:$0xff]  ;;  %s1021_s16 = sshll.u32 %s1271_s24, 5  ;;  %v681_v54 = vlaneseq  ;;  %p989_p1 = scmp.ne.s32.totalorder %s1271_s24, 1 }
  0x37   : > { %515 = vmatpush.bf16.msra.mxu0 %v1004_v1  ;;  %v1020_v3 = vld [vmem:[%s1425_s20 + $0x38] sm:$0xff]  ;;  %v1019_v5 = vld [vmem:[%s1425_s20 + $0x30] sm:$0xff]  ;;  %v1018_v8 = vld [vmem:[%s1425_s20 + $0x28] sm:$0xff]  ;;  %s1463_s17 = sadd.s32 32, %s1021_s16 }
  0x38   : > { %v1012_v4 = vld [vmem:[%s1412_s23 + $0x38] sm:$0xff]  ;;  %641 = vmatpush.bf16.msra.mxu2 %v1020_v3  ;;  %v1011_v7 = vld [vmem:[%s1412_s23 + $0x30] sm:$0xff]  ;;  %v1001_v9 = vld [vmem:[%s1405_s3 + $0x20] sm:$0xff]  ;;  %s658_s13 = sadd.s32 32, %s1463_s17  ;;  %v682_v56 = vand.u32 127, %v681_v54 }
  0x39   : > { %579 = vmatpush.bf16.msra.mxu1 %v1012_v4  ;;  %v1010_v10 = vld [vmem:[%s1412_s23 + $0x28] sm:$0xff]  ;;  %v1017_v11 = vld [vmem:[%s1425_s20 + $0x20] sm:$0xff]  ;;  %v1000_v12 = vld [vmem:[%s1405_s3 + $0x18] sm:$0xff]  ;;  %s659_s18 = scvt.s32.f32 %s658_s13  ;;  %v683_v57 = vstv %s658_s13 }
  0x3a   : > { %v1009_v13 = vld [vmem:[%s1412_s23 + $0x20] sm:$0xff]  ;;  %v1016_v14 = vld [vmem:[%s1425_s20 + $0x18] sm:$0xff]  ;;  %v999_v15 = vld [vmem:[%s1405_s3 + $0x10] sm:$0xff]  ;;  %vm684_vm4 = vcmp.lt.s32.totalorder %v682_v56, %v683_v57 }
  0x3b   : > { %516 = vmatpush.bf16.msra.mxu0 %v1003_v2  ;;  %v1008_v16 = vld [vmem:[%s1412_s23 + $0x18] sm:$0xff]  ;;  %v1015_v17 = vld [vmem:[%s1425_s20 + $0x10] sm:$0xff]  ;;  %v998_v18 = vld [vmem:[%s1405_s3 + $0x8] sm:$0xff]  ;;  %v660_v37 = vstv %s659_s18 }
  0x3c   : > { %642 = vmatpush.bf16.msra.mxu2 %v1019_v5  ;;  %v1007_v19 = vld [vmem:[%s1412_s23 + $0x10] sm:$0xff]  ;;  %v1014_v20 = vld [vmem:[%s1425_s20 + $0x8] sm:$0xff]  ;;  %v997_v21 = vld [vmem:[%s1405_s3] sm:$0xff]  ;;  %1099 = vrcp.f32 %v660_v37  ;;  %v672_v40 = vand.u32 2147483648, %v660_v37  ;;  %vm666_vm0 = vweird.f32 %v660_v37  ;;  %v670_v42 = vand.u32 2147483647, %v660_v37 }
  0x3d   : > { %580 = vmatpush.bf16.msra.mxu1 %v1011_v7  ;;  %v415_v22 = vld [vmem:[#allocation2] sm:$0xff]  ;;  %v1013_v24 = vld [vmem:[%s1425_s20] sm:$0xff]  ;;  %v1006_v26 = vld [vmem:[%s1412_s23 + $0x8] sm:$0xff] }
  0x3e   : > { %v465_v23 = vpack.c.bf16 %v415_v22, %v415_v22  ;;  %v592_v25 = vld [vmem:[%s1493_s1] sm:$0xf]  ;;  %v1005_v27 = vld [vmem:[%s1412_s23] sm:$0xff]  ;;  %v673_v44 = vor.u32 1.1754944e-38, %v672_v40  ;;  %vm671_vm3 = vcmp.eq.f32.partialorder %v670_v42, 8.507059e+37 }
  0x3f   : > { %517 = vmatpush.bf16.msra.mxu0 %v1002_v6  ;;  %v1459_v28 = vld [vmem:[%s1423_s12] sm:$0xff] }
  0x40   : > { %643 = vmatpush.bf16.msra.mxu2 %v1018_v8  ;;  %v466_v29 = vperm.slane %v1459_v28, 0  ;;  %v530_v48 = vperm.slane %v1459_v28, 1  ;;  %v704_v8 = vperm.slane %v1459_v28, 2 }
  0x41   : > { %581 = vmatpush.bf16.msra.mxu1 %v1010_v10  ;;  %v706_v10 = vperm.slane %v1459_v28, 3 }
  0x42   : > { %v1100_v38 = vpop.eup %1099 }
  0x43   : > { %518 = vmatpush.bf16.msra.mxu0 %v1001_v9  ;;  %v662_v39 = vmul.f32 %v1100_v38, %v660_v37  ;;  %vm667_vm1 = vweird.f32 %v1100_v38 }
  0x44   : > { %644 = vmatpush.bf16.msra.mxu2 %v1017_v11  ;;  %vm668_vm2 = vmor %vm666_vm0, %vm667_vm1 }
  0x45   : > { %582 = vmatpush.bf16.msra.mxu1 %v1009_v13  ;;  %v663_v41 = vsub.f32 1.0, %v662_v39 }
  0x47   : > { %519 = vmatpush.bf16.msra.mxu0 %v1000_v12  ;;  %v664_v43 = vmul.f32 %v1100_v38, %v663_v41 }
  0x48   : > { %645 = vmatpush.bf16.msra.mxu2 %v1016_v14 }
  0x49   : > { %583 = vmatpush.bf16.msra.mxu1 %v1008_v16  ;;  %v665_v45 = vadd.f32 %v1100_v38, %v664_v43 }
  0x4b   : > { %520 = vmatpush.bf16.msra.mxu0 %v999_v15  ;;  %v669_v46 = vsel %vm668_vm2, %v1100_v38, %v665_v45 }
  0x4c   : > { %646 = vmatpush.bf16.msra.mxu2 %v1015_v17  ;;  %v674_v47 = vsel %vm671_vm3, %v673_v44, %v669_v46 }
  0x4d   : > { %584 = vmatpush.bf16.msra.mxu1 %v1007_v19  ;;  %1023 = vpush %v674_v47 }
  0x4f   : > { %521 = vmatpush.bf16.msra.mxu0 %v998_v18 }
  0x50   : > { %647 = vmatpush.bf16.msra.mxu2 %v1014_v20 }
  0x51   : > { %585 = vmatpush.bf16.msra.mxu1 %v1006_v26 }
  0x53   : > { %522 = vmatpush.bf16.msra.mxu0 %v997_v21 }
  0x54   : > { %648 = vmatpush.bf16.msra.mxu2 %v1013_v24 }
  0x55   : > { %586 = vmatpush.bf16.msra.mxu1 %v1005_v27 }
  0x56   : > { %523 = vmatmul.bf16.vlgmr.msra.gmra.mxu0 %v465_v23 }
  0x57   : > { %649 = vmatmul.bf16.vlgmr.msra.gmra.mxu2 %v592_v25 }
  0x7e   : > { %s1024_s19 = spop %1023 }
  0x7f   : > { %v678_v55 = vstv %s1024_s19 }
  0xd3   : > { %v524_v30 = vpop.f32.mrf.mxu0 }
  0xd4   : > { %v525_v31 = vadd.f32 %v524_v30, %v466_v29 }
  0xd6   : > { %v528_v32 = vmax.f32 %v525_v31, 0.0 }
  0xd8   : > { %v529_v33 = vpack.c.bf16 %v528_v32, %v528_v32 }
  0xda   : > { %587 = vmatmul.bf16.vlgmr.msra.gmra.mxu1 %v529_v33  ;;  %v650_v35 = vpop.f32.mrf.mxu2 }
  0xdb   : > { %v526_v34 = vpop.f32.mrf.mxu0 }
  0xe2   : > { %v652_v36 = vpop.f32.mrf.mxu2 }
 0x157   : > { %v588_v49 = vpop.f32.mrf.mxu1 }
 0x158   : > { %v589_v50 = vadd.f32 %v588_v49, %v530_v48 }
 0x15a   : > { %v654_v51 = vadd.f32 %v589_v50, %v415_v22 }
 0x15c   : > { %v655_v52 = vadd.f32 %v654_v51, %v650_v35 }
 0x15e   : > { %676 = vadd.xlane.f32.xlu0 %v655_v52 }
 0x15f   : > { %v590_v53 = vpop.f32.mrf.mxu1 }
 0x1d1   : > { %v677_v58 = vpop.xlane.xlu0 %676 }
 0x1d2   : > { %v679_v59 = vmul.f32 %v678_v55, %v677_v58 }
 0x1d4   : > { %v680_v60 = vsub.f32 %v655_v52, %v679_v59 }
 0x1d6   : > { %v687_v61 = vsel %vm684_vm4, %v680_v60, 0.0 }
 0x1d7   : > { %v688_v62 = vmul.f32 %v687_v61, %v687_v61 }
 0x1d9   : > { %689 = vadd.xlane.f32.xlu0 %v688_v62 }
 0x24c   : > { %v690_v63 = vpop.xlane.xlu0 %689 }
 0x24d   : > { %v691_v0 = vmul.f32 %v690_v63, %v678_v55 }
 0x24f   : > { %v692_v1 = vadd.f32 1e-05, %v691_v0 }
 0x251   : > { %1101 = vrsqrt.f32 %v692_v1  ;;  %vm699_vm6 = vweird.f32 %v692_v1 }
 0x257   : > { %v1102_v2 = vpop.eup %1101 }
 0x258   : > { %v694_v3 = vmul.f32 %v1102_v2, %v692_v1  ;;  %vm700_vm5 = vweird.f32 %v1102_v2 }
 0x259   : > { %vm701_vm7 = vmor %vm699_vm6, %vm700_vm5 }
 0x25a   : > { %v695_v4 = vmul.f32 %v1102_v2, %v694_v3 }
 0x25c   : > { %v696_v5 = vmul.f32 0.5, %v695_v4 }
 0x25e   : > { %v697_v6 = vsub.f32 1.5, %v696_v5 }
 0x260   : > { %v698_v7 = vmul.f32 %v1102_v2, %v697_v6 }
 0x262   : > { %v702_v9 = vsel %vm701_vm7, %v1102_v2, %v698_v7 }
 0x263   : > { %v703_v11 = vmul.f32 %v702_v9, %v680_v60 }
 0x265   : > { %v705_v12 = vmul.f32 %v704_v8, %v703_v11  ;;  %712 = sbr.rel (%p989_p1) target bundleno = 626 (0x272), region = 64 }
 0x267   : > { %v707_v13 = vadd.f32 %v706_v10, %v705_v12 }
 0x269   : > { %708 = vst [vmem:[#allocation2] sm:$0xff] %v707_v13 }
 0x270   : > { %v713_v14 = vld [vmem:[#allocation2] sm:$0xff] }
 0x271   : > { %714 = vst [vmem:[#allocation9] sm:$0xff] %v713_v14 }
 0x272 PF: > { %p1046_p2 = scmp.eq.s32.totalorder %s1348_s27, 1  ;;  %s725_s15 = sshll.u32 %s1498_s6, 4  ;;  %s726_s15 = int_to_ptr.hbm [resolvable:$true] %s725_s15 }
 0x273   : > { %s1283_s3 = smov [#allocation9]  }
 0x274   : > { %s723_s25 = sshll.u32 %s1283_s3, 4  ;;  %s724_s25 = int_to_ptr.vmem [resolvable:$true] %s723_s25 }
 0x275   : > { %1032 = dma.vmem_to_hbm [thread:$0]  (%p1046_p2), %s724_s25, 128, %s726_s15, [#allocation5]  }
 0x276   : > { %1254 = dma.done.wait (%p1046_p2), [#allocation5], 128  }
 0x277   : > { %1256 = vsyncadd (%p1046_p2), [#allocation5], 4294967168 }
 0x278 PF: > { %s1513_s28 = sld [smem:[#allocation15_spill]]  ;;  %s1518_s21 = smov %s1263_s22 }
 0x279   : > { %s1514_s24 = sld [smem:[#allocation13_spill]] }
 0x27a   : > { %s1515_s23 = sld [smem:[#allocation17_spill]] }
 0x27b   : > { %s1516_s8 = sld [smem:[#allocation14_spill]] }
 0x27c   : > { %s1517_s25 = sld [smem:[#allocation16_spill]] }
 0x27e   : > { %s23_s26 = sadd.s32 1, %s1513_s28  }
 0x27f   : > { %p20_p3 = scmp.ge.s32.totalorder %s23_s26, 4   ;;  %s1519_s22 = smov %s1514_s24 }
 0x281   : > { %s1520_s24 = smov %s1516_s8  ;;  %22 = sbr.rel (!%p20_p3) target bundleno = 9 (0x9), region = 123 }
 0x286   :  { %739 = vsyncpa [#allocation4], 1 }
 0x287   :  { %741 = vsyncpa [#allocation4 + $0x1], 1 }
 0x288   :  { %742 = vsyncpa [#allocation7], 1 }
 0x289   :  { %744 = vsyncpa [#allocation7 + $0x1], 1 }
 0x28a   :  { %745 = vsyncpa [#allocation5], 1 }
 0x28b   :  { %747 = vsyncpa [#allocation5 + $0x1], 1 }

</bundles_post_ra>
